<compile_context>
chip_gen: v6e
topology: v6e:2x2x1
jax: 0.10.0
libtpu: 0.0.40
codegen_flags: <defaults>
</compile_context>

<pallas_src>
import functools

import jax
import jax.numpy as jnp
from jax import lax
from jax.experimental import pallas as pl
from jax.experimental.pallas import tpu as pltpu


def _round_up(x, m):
    return -(-x // m) * m


# ------------------------------- Kernels -------------------------------------
def _conv0_stats_kernel(x_ref, w_ref, b_ref, h_ref, stats_ref,
                        *, c0, tn, n_valid, mask_rows):
    """Layer 0: tiny K=3 channel matmul as f32 VPU FMAs + per-tile BN partial sums."""
    x = x_ref[...]                                   # (tn, c0) f32 raw coordinates
    w = w_ref[...]                                   # (c0, c1) f32
    h = x[:, 0:1] * w[0:1, :]
    for k in range(1, c0):                           # c0 == 3, fully unrolled
        h = h + x[:, k:k + 1] * w[k:k + 1, :]
    h = h + b_ref[...]                               # (tn, c1) f32
    h_ref[...] = h.astype(h_ref.dtype)               # bf16 intermediate
    if mask_rows:                                    # static guard: only for padded N
        row = pl.program_id(1) * tn + lax.broadcasted_iota(jnp.int32, (tn, 1), 0)
        h = jnp.where(row < n_valid, h, 0.0)
    stats_ref[...] = jnp.concatenate(                # one full-block store
        [jnp.sum(h, axis=0, keepdims=True),
         jnp.sum(h * h, axis=0, keepdims=True)], axis=0)


def _bn_fold(s_ref, g_ref, bt_ref, inv_count, eps):
    """Fold train-mode BatchNorm1d into scale/shift from summed (2,C) statistics."""
    s = s_ref[...]                                   # (2, cin) f32
    mean = s[0:1, :] * inv_count
    var = s[1:2, :] * inv_count - mean * mean        # biased variance (BN train mode)
    a = g_ref[...] * lax.rsqrt(var + eps)
    c = bt_ref[...] - mean * a
    return a, c


def _bn_relu_conv_stats_kernel(h_ref, s_ref, g_ref, bt_ref, w_ref, b_ref,
                               o_ref, stats_ref,
                               *, inv_count, eps, tn, n_valid, mask_rows):
    """Middle layer: in-kernel BN fold + ReLU + matmul + partial sums for next BN."""
    a, c = _bn_fold(s_ref, g_ref, bt_ref, inv_count, eps)
    y = jnp.maximum(h_ref[...].astype(jnp.float32) * a + c, 0.0)
    o = jnp.dot(y.astype(jnp.bfloat16), w_ref[...],
                preferred_element_type=jnp.float32) + b_ref[...]
    o_ref[...] = o.astype(o_ref.dtype)
    if mask_rows:
        row = pl.program_id(1) * tn + lax.broadcasted_iota(jnp.int32, (tn, 1), 0)
        o = jnp.where(row < n_valid, o, 0.0)
    stats_ref[...] = jnp.concatenate(
        [jnp.sum(o, axis=0, keepdims=True),
         jnp.sum(o * o, axis=0, keepdims=True)], axis=0)


def _bn_relu_conv_out_kernel(h_ref, s_ref, g_ref, bt_ref, w_ref, b_ref, o_ref,
                             *, inv_count, eps):
    """Final layer: BN fold + ReLU + matmul, output transposed in-kernel (XLU) to
    channel-major so the wrapper needs no XLA transpose."""
    a, c = _bn_fold(s_ref, g_ref, bt_ref, inv_count, eps)
    y = jnp.maximum(h_ref[...].astype(jnp.float32) * a + c, 0.0)
    o = jnp.dot(y.astype(jnp.bfloat16), w_ref[...],
                preferred_element_type=jnp.float32) + b_ref[...]   # (tn, cout) f32
    o_ref[...] = jnp.transpose(o, (1, 0)).astype(o_ref.dtype)      # (cout, tn)


# ------------------------------- Wrapper --------------------------------------
def keypoint_encoder3d(kpts, conv_params, bn_params, *, eps=1e-5, row_tile=512):
    """
    kpts        : (B, C0, N) PyTorch NCW layout (C0 = 3 for 3-D keypoints).
    conv_params : list of (w, b) per Conv1d(k=1), w: (C_out, C_in), b: (C_out,).
    bn_params   : list of (gamma, beta) per BatchNorm1d (one per conv except last).
    row_tile    : keypoints per grid step (sweep 512-2048 per chip / problem size).
    Returns (B, feature_dim, N), matching KeypointEncoder3d.forward in train mode.
    """
    B, C0, N = kpts.shape
    n_layers = len(conv_params)
    assert n_layers >= 2 and len(bn_params) == n_layers - 1

    # ---- tiling over the keypoint axis (lane-aligned, tunable) ----------------
    tn = min(_round_up(row_tile, 128), _round_up(N, 128))
    N_pad = _round_up(N, tn)
    Tn = N_pad // tn
    if B * Tn < 2 and N_pad >= 256:                  # keep >=2 programs for v7x megacore
        tn = _round_up(N_pad // 2, 128)
        N_pad = _round_up(N, tn)
        Tn = N_pad // tn
    mask_rows = (N_pad != N)
    R = B * N                                        # true element count for BN stats
    inv_count = 1.0 / float(R)

    # Channels-last keypoints; zero-pad only along N (3-lane-wide f32, tiny).
    x = jnp.transpose(kpts, (0, 2, 1)).astype(jnp.float32)     # (B, N, 3)
    if mask_rows:
        x = jnp.pad(x, ((0, 0), (0, N_pad - N), (0, 0)))

    def rep_spec(shape):
        nd = len(shape)
        return pl.BlockSpec(shape, lambda b, j, _n=nd: (0,) * _n)

    parallel2 = pltpu.CompilerParams(
        dimension_semantics=("parallel", "parallel"))
    # NOTE: default scoped-VMEM limit is ample here (tiles are <= a few MiB each).

    # ---------------- layer 0: f32 K=3 conv + partial BN stats -----------------
    w0, b0 = conv_params[0]
    C1 = w0.shape[0]
    h, stats = pl.pallas_call(
        functools.partial(_conv0_stats_kernel, c0=C0, tn=tn, n_valid=N,
                          mask_rows=mask_rows),
        out_shape=(jax.ShapeDtypeStruct((B, N_pad, C1), jnp.bfloat16),
                   jax.ShapeDtypeStruct((B, Tn, 2, C1), jnp.float32)),
        grid_spec=pltpu.PrefetchScalarGridSpec(
            num_scalar_prefetch=0,
            grid=(B, Tn),
            in_specs=[
                pl.BlockSpec((None, tn, C0), lambda b, j: (b, j, 0)),
                rep_spec((C0, C1)),
                rep_spec((1, C1)),
            ],
            out_specs=(
                pl.BlockSpec((None, tn, C1), lambda b, j: (b, j, 0)),
                pl.BlockSpec((None, None, 2, C1), lambda b, j: (b, j, 0, 0)),
            ),
        ),
        compiler_params=parallel2,
    )(x, w0.T.astype(jnp.float32), b0.astype(jnp.float32)[None, :])

    out = None
    for li in range(1, n_layers):
        # Only inter-call glue: sum per-tile partials -> (2, C_in).  The BN fold
        # (mean/var/rsqrt/scale/shift) happens inside the consumer kernel.
        # TODO(synk): running-mean/var (momentum) buffer updates are training-state
        # side effects that do not affect the forward output; not computed here.
        s_sum = jnp.sum(stats, axis=(0, 1))
        gamma, beta = bn_params[li - 1]
        g2 = gamma.astype(jnp.float32)[None, :]
        bt2 = beta.astype(jnp.float32)[None, :]

        w, b = conv_params[li]
        cout, cin = w.shape
        w_t = w.T.astype(jnp.bfloat16)
        b2 = b.astype(jnp.float32)[None, :]
        is_last = (li == n_layers - 1)

        in_specs = [
            pl.BlockSpec((None, tn, cin), lambda bi, j: (bi, j, 0)),
            rep_spec((2, cin)),
            rep_spec((1, cin)),
            rep_spec((1, cin)),
            rep_spec((cin, cout)),
            rep_spec((1, cout)),
        ]

        if is_last:
            out = pl.pallas_call(
                functools.partial(_bn_relu_conv_out_kernel,
                                  inv_count=inv_count, eps=eps),
                out_shape=jax.ShapeDtypeStruct((B, cout, N_pad), jnp.float32),
                grid_spec=pltpu.PrefetchScalarGridSpec(
                    num_scalar_prefetch=0,
                    grid=(B, Tn),
                    in_specs=in_specs,
                    out_specs=pl.BlockSpec((None, cout, tn),
                                           lambda bi, j: (bi, 0, j)),
                ),
                compiler_params=parallel2,
            )(h, s_sum, g2, bt2, w_t, b2)
        else:
            h, stats = pl.pallas_call(
                functools.partial(_bn_relu_conv_stats_kernel,
                                  inv_count=inv_count, eps=eps, tn=tn,
                                  n_valid=N, mask_rows=mask_rows),
                out_shape=(jax.ShapeDtypeStruct((B, N_pad, cout), jnp.bfloat16),
                           jax.ShapeDtypeStruct((B, Tn, 2, cout), jnp.float32)),
                grid_spec=pltpu.PrefetchScalarGridSpec(
                    num_scalar_prefetch=0,
                    grid=(B, Tn),
                    in_specs=in_specs,
                    out_specs=(
                        pl.BlockSpec((None, tn, cout), lambda bi, j: (bi, j, 0)),
                        pl.BlockSpec((None, None, 2, cout),
                                     lambda bi, j: (bi, j, 0, 0)),
                    ),
                ),
                compiler_params=parallel2,
            )(h, s_sum, g2, bt2, w_t, b2)

    if mask_rows:
        out = out[:, :, :N]
    return out                                        # (B, feature_dim, N)


# --------------------------- Pure-JAX reference --------------------------------
def reference(kpts, conv_params, bn_params, eps=1e-5):
    P = lax.Precision.HIGHEST
    x = kpts
    n = len(conv_params)
    for i, (w, b) in enumerate(conv_params):
        x = jnp.einsum("oc,bcn->bon", w, x, precision=P) + b[None, :, None]
        if i < n - 1:
            gamma, beta = bn_params[i]
            mean = x.mean(axis=(0, 2))
            var = ((x - mean[None, :, None]) ** 2).mean(axis=(0, 2))
            x = (x - mean[None, :, None]) / jnp.sqrt(var[None, :, None] + eps)
            x = x * gamma[None, :, None] + beta[None, :, None]
            x = jnp.maximum(x, 0.0)
    return x


# ---------------------------------- Main ---------------------------------------
if __name__ == "__main__":
    B, N = 2, 256                       # batch, number of 3-D keypoints
    layers = [128, 128]                 # hidden widths (lane-dense multiples of 128)
    feature_dim = 128
    channels = [3] + layers + [feature_dim]

    key = jax.random.PRNGKey(0)
    conv_params, bn_params = [], []
    for i in range(1, len(channels)):
        key, kw, kb, kg, kbt = jax.random.split(key, 5)
        w = 0.1 * jax.random.normal(kw, (channels[i], channels[i - 1]), jnp.float32)
        if i == len(channels) - 1:
            b = jnp.zeros((channels[i],), jnp.float32)   # nn.init.constant_(bias, 0.0)
        else:
            b = 0.1 * jax.random.normal(kb, (channels[i],), jnp.float32)
        conv_params.append((w, b))
        if i < len(channels) - 1:
            gamma = 1.0 + 0.1 * jax.random.normal(kg, (channels[i],), jnp.float32)
            beta = 0.1 * jax.random.normal(kbt, (channels[i],), jnp.float32)
            bn_params.append((gamma, beta))

    key, kx = jax.random.split(key)
    kpts = jax.random.normal(kx, (B, 3, N), jnp.float32)     # PyTorch NCW layout

    out = jax.block_until_ready(keypoint_encoder3d(kpts, conv_params, bn_params))
    ref = jax.block_until_ready(reference(kpts, conv_params, bn_params))

    assert out.shape == (B, feature_dim, N)
    max_err = float(jnp.max(jnp.abs(out - ref)))
    assert bool(jnp.allclose(out, ref, rtol=5e-2, atol=5e-2)), (
        "mismatch vs reference, max abs err = " + str(max_err))
    print("KERNEL_OK")
</pallas_src>

<mosaic_0001>
module attributes {stable_mosaic.version = 11 : i64} {
  func.func @_conv0_stats_kernel(%arg0: i32, %arg1: i32, %arg2: memref<1x256x3xf32, #tpu.memory_space<vmem>>, %arg3: memref<3x128xf32, #tpu.memory_space<vmem>>, %arg4: memref<1x128xf32, #tpu.memory_space<vmem>>, %arg5: memref<1x256x128xbf16, #tpu.memory_space<vmem>>, %arg6: memref<1x1x2x128xf32, #tpu.memory_space<vmem>>) attributes {dimension_semantics = [#tpu.dimension_semantics<parallel>, #tpu.dimension_semantics<parallel>], iteration_bounds = array<i64: 2, 1>, scalar_prefetch = 0 : i64, scratch_operands = 0 : i64, tpu.core_type = #tpu.core_type<tc>, window_params = [{transform_indices = @transform_0, window_bounds = array<i64: 1, 256, 3>}, {pipeline_mode = #tpu.pipeline_mode<synchronous>, transform_indices = @transform_1, window_bounds = array<i64: 3, 128>}, {pipeline_mode = #tpu.pipeline_mode<synchronous>, transform_indices = @transform_2, window_bounds = array<i64: 1, 128>}, {transform_indices = @transform_3, window_bounds = array<i64: 1, 256, 128>}, {transform_indices = @transform_4, window_bounds = array<i64: 1, 1, 2, 128>}]} {
    %c0 = arith.constant 0 : index
    %c0_0 = arith.constant 0 : index
    %c0_1 = arith.constant 0 : index
    %0 = vector.load %arg2[%c0, %c0_0, %c0_1] : memref<1x256x3xf32, #tpu.memory_space<vmem>>, vector<1x256x3xf32>
    %1 = vector.shape_cast %0 : vector<1x256x3xf32> to vector<256x3xf32>
    %c0_2 = arith.constant 0 : index
    %c0_3 = arith.constant 0 : index
    %2 = vector.load %arg3[%c0_2, %c0_3] : memref<3x128xf32, #tpu.memory_space<vmem>>, vector<3x128xf32>
    %3 = vector.extract_strided_slice %1 {offsets = [0, 0], sizes = [256, 1], strides = [1, 1]} : vector<256x3xf32> to vector<256x1xf32>
    %4 = vector.extract_strided_slice %2 {offsets = [0, 0], sizes = [1, 128], strides = [1, 1]} : vector<3x128xf32> to vector<1x128xf32>
    %5 = vector.broadcast %3 : vector<256x1xf32> to vector<256x128xf32>
    %6 = vector.broadcast %4 : vector<1x128xf32> to vector<256x128xf32>
    %7 = arith.mulf %5, %6 : vector<256x128xf32>
    %8 = vector.extract_strided_slice %1 {offsets = [0, 1], sizes = [256, 1], strides = [1, 1]} : vector<256x3xf32> to vector<256x1xf32>
    %9 = vector.extract_strided_slice %2 {offsets = [1, 0], sizes = [1, 128], strides = [1, 1]} : vector<3x128xf32> to vector<1x128xf32>
    %10 = vector.broadcast %8 : vector<256x1xf32> to vector<256x128xf32>
    %11 = vector.broadcast %9 : vector<1x128xf32> to vector<256x128xf32>
    %12 = arith.mulf %10, %11 : vector<256x128xf32>
    %13 = arith.addf %7, %12 : vector<256x128xf32>
    %14 = vector.extract_strided_slice %1 {offsets = [0, 2], sizes = [256, 1], strides = [1, 1]} : vector<256x3xf32> to vector<256x1xf32>
    %15 = vector.extract_strided_slice %2 {offsets = [2, 0], sizes = [1, 128], strides = [1, 1]} : vector<3x128xf32> to vector<1x128xf32>
    %16 = vector.broadcast %14 : vector<256x1xf32> to vector<256x128xf32>
    %17 = vector.broadcast %15 : vector<1x128xf32> to vector<256x128xf32>
    %18 = arith.mulf %16, %17 : vector<256x128xf32>
    %19 = arith.addf %13, %18 : vector<256x128xf32>
    %c0_4 = arith.constant 0 : index
    %c0_5 = arith.constant 0 : index
    %20 = vector.load %arg4[%c0_4, %c0_5] : memref<1x128xf32, #tpu.memory_space<vmem>>, vector<1x128xf32>
    %21 = vector.broadcast %20 : vector<1x128xf32> to vector<256x128xf32>
    %22 = arith.addf %19, %21 : vector<256x128xf32>
    %23 = arith.truncf %22 : vector<256x128xf32> to vector<256x128xbf16>
    %c0_6 = arith.constant 0 : index
    %c0_7 = arith.constant 0 : index
    %c0_8 = arith.constant 0 : index
    %24 = vector.load %arg5[%c0_6, %c0_7, %c0_8] : memref<1x256x128xbf16, #tpu.memory_space<vmem>>, vector<1x256x128xbf16>
    %25 = vector.shape_cast %24 : vector<1x256x128xbf16> to vector<256x128xbf16>
    %26 = vector.shape_cast %23 : vector<256x128xbf16> to vector<1x256x128xbf16>
    tpu.vector_store %arg5[%c0_6, %c0_7, %c0_8], %26 {strides = array<i32>} : memref<1x256x128xbf16, #tpu.memory_space<vmem>>, vector<1x256x128xbf16>,
    %cst = arith.constant dense<0.000000e+00> : vector<128xf32>
    %27 = vector.multi_reduction <add>, %22, %cst [0] : vector<256x128xf32> to vector<128xf32>
    %28 = vector.shape_cast %27 : vector<128xf32> to vector<1x128xf32>
    %29 = arith.mulf %22, %22 : vector<256x128xf32>
    %cst_9 = arith.constant dense<0.000000e+00> : vector<128xf32>
    %30 = vector.multi_reduction <add>, %29, %cst_9 [0] : vector<256x128xf32> to vector<128xf32>
    %31 = vector.shape_cast %30 : vector<128xf32> to vector<1x128xf32>
    %32 = tpu.concatenate %28, %31 in 0 : vector<1x128xf32>, vector<1x128xf32> -> vector<2x128xf32>
    %c0_10 = arith.constant 0 : index
    %c0_11 = arith.constant 0 : index
    %c0_12 = arith.constant 0 : index
    %c0_13 = arith.constant 0 : index
    %33 = vector.load %arg6[%c0_10, %c0_11, %c0_12, %c0_13] : memref<1x1x2x128xf32, #tpu.memory_space<vmem>>, vector<1x1x2x128xf32>
    %34 = vector.shape_cast %33 : vector<1x1x2x128xf32> to vector<2x128xf32>
    %35 = vector.shape_cast %32 : vector<2x128xf32> to vector<1x1x2x128xf32>
    tpu.vector_store %arg6[%c0_10, %c0_11, %c0_12, %c0_13], %35 {strides = array<i32>} : memref<1x1x2x128xf32, #tpu.memory_space<vmem>>, vector<1x1x2x128xf32>,
    return
  }
  func.func @transform_0(%arg0: i32, %arg1: i32) -> (i32, i32, i32) {
    %c0_i32 = arith.constant 0 : i32
    %c0_i32_0 = arith.constant 0 : i32
    return %arg0, %arg1, %c0_i32 : i32, i32, i32
  }
  func.func @transform_1(%arg0: i32, %arg1: i32) -> (i32, i32) {
    %c0_i32 = arith.constant 0 : i32
    %c0_i32_0 = arith.constant 0 : i32
    %c0_i32_1 = arith.constant 0 : i32
    return %c0_i32, %c0_i32_0 : i32, i32
  }
  func.func @transform_2(%arg0: i32, %arg1: i32) -> (i32, i32) {
    %c0_i32 = arith.constant 0 : i32
    %c0_i32_0 = arith.constant 0 : i32
    %c0_i32_1 = arith.constant 0 : i32
    return %c0_i32, %c0_i32_0 : i32, i32
  }
  func.func @transform_3(%arg0: i32, %arg1: i32) -> (i32, i32, i32) {
    %c0_i32 = arith.constant 0 : i32
    %c0_i32_0 = arith.constant 0 : i32
    return %arg0, %arg1, %c0_i32 : i32, i32, i32
  }
  func.func @transform_4(%arg0: i32, %arg1: i32) -> (i32, i32, i32, i32) {
    %c0_i32 = arith.constant 0 : i32
    %c0_i32_0 = arith.constant 0 : i32
    %c0_i32_1 = arith.constant 0 : i32
    return %arg0, %arg1, %c0_i32, %c0_i32_0 : i32, i32, i32, i32
  }
}

</mosaic_0001>

<bundles_post_ra>
// kernel: tpu_custom_call.1
= control target key start
LH: loop header
LB: loop body
LE: loop exit
PB: predicated region body
PF: predicated region fallthrough
CT: control target
= control target key end

     0   :  { %10 = vsyncpa [#allocation3], 0  ;;  %s2452_s0 = inlined_call_operand.vmem [shape: f32[2,256,3], index: 0, kind: input, shape index: {}]   ;;  %s2453_s1 = inlined_call_operand.vmem [shape: f32[3,128], index: 1, kind: input, shape index: {}]   ;;  %s2454_s2 = inlined_call_operand.vmem [shape: f32[1,128], index: 2, kind: input, shape index: {}]   ;;  %s2455_s3 = inlined_call_operand.hbm [shape: bf16[2,256,128], index: 3, kind: output, shape index: {0}]   ;;  %s2456_s4 = inlined_call_operand.hbm [shape: f32[2,1,2,128], index: 4, kind: output, shape index: {1}]  }
   0x1   :  { %12 = vsyncpa [#allocation3 + $0x1], 0 }
   0x2   :  { %13 = vsyncpa [#allocation5], 0 }
   0x3   :  { %15 = vsyncpa [#allocation5 + $0x1], 0  ;;  %s1707_s15 = smov 0   ;;  %s1709_s16 = smov 0  }
   0x4   :  { %s1711_s17 = smov 0   ;;  %s1713_s18 = smov 0  }
   0x5   :  { %s1715_s19 = smov 0   ;;  %s1717_s20 = smov 0  }
   0x6 LB: > { %s1316_s21 = sadd.s32 4294967295, %s1673_s20   ;;  %s1317_s22 = sadd.s32 4294967294, %s1673_s20   ;;  %s1673_s20 = sphi %s1717_s20, %s21_s20   ;;  %s1669_s19 = sphi %s1715_s19, %s2485_s19   ;;  %s1665_s18 = sphi %s1713_s18, %s2484_s18   ;;  %s1661_s17 = sphi %s1711_s17, %s2483_s17   ;;  %s1657_s16 = sphi %s1709_s16, %s2482_s16   ;;  %s1653_s15 = sphi %s1707_s15, %s2481_s15  }
   0x7   : > { %s33_s23 = sadd.s32 1, %s1669_s19  ;;  %s112_s24 = sadd.s32 1, %s1661_s17 }
   0x8   : > { %p35_p0 = scmp.ge.s32.totalorder %s33_s23, 2  ;;  %p122_p1 = scmp.ne.s32.totalorder %s1661_s17, %s1657_s16 }
   0x9   : > { %p123_p2 = scmp.eq.s32.totalorder %s1316_s21, 1  ;;  %p128_p3 = scmp.ne.s32.totalorder %s1657_s16, %s1653_s15 }
   0xa   : > { %s2487_s23 = smov (%p35_p0, %s33_s23), 0  ;;  %p129_p5 = scmp.eq.s32.totalorder %s1317_s22, 1 }
   0xb   : > { %p1747_p4 = por %p123_p2, %p122_p1  ;;  %s107_s26 = ssub.s32 %s1669_s19, %s2487_s23 }
   0xc   : > { %p1320_p6 = scmp.ge.s32.totalorder %s1673_s20, 1  ;;  %p110_p7 = scmp.eq.s32.totalorder %s107_s26, 0 }
   0xd   : > { %p1754_p8 = por %p129_p5, %p128_p3  ;;  %p194_p9 = scmp.lt.s32.totalorder %s1673_s20, 3 }
   0xe   : > { %s1760_s28 = scalar_select %p110_p7, %s1661_s17, %s112_s24  }
   0xf   : > { %p195_p10 = pnand %p1320_p6, %p194_p9 }
  0x11   : > { %198 = sbr.rel (%p195_p10) target bundleno = 395 (0x18b), region = 32 }
  0x16   : > { %p230_p11 = scmp.lt.s32.totalorder %s1665_s18, 1  ;;  %v1675_v0 = vmov 0   ;;  %v1676_v33 = vmov 1   ;;  %v1677_v34 = vmov 2   ;;  %v433_v57 = vlaneseq  ;;  %s2169_s10 = sand.u32 1, %s1657_s16  }
  0x17   : > { %1560 = vset.pattern.permute.xlu1 %v1675_v0  ;;  %1559 = vset.pattern.permute.xlu0 %v1675_v0  ;;  %v272_v0 = vld [vmem:[%s2453_s1] sm:$0x7]  ;;  %s1321_s13 = sshll.u32 %s2169_s10, 7  ;;  %s1398_s21 = sshll.u32 %s1665_s18, 11 }
  0x18   : > { %s231_s29 = scalar_select %p230_p11, %s1665_s18, 1  ;;  %v434_v60 = vshrl.u32 %v433_v57, 7 }
  0x19   : > { %s2230_s14 = scalar_lea.vmem [#allocation2], %s1321_s13  ;;  %s1678_s6 = smov [#allocation2]  }
  0x1a   : > { %s1365_s30 = sshll.u32 %s231_s29, 8  ;;  %v435_v63 = vsub.s32 0, %v434_v60  ;;  %s1190_s22 = sshll.u32 %s2230_s14, 4  ;;  %s2380_s22 = int_to_ptr.vmem [resolvable:$true] %s1190_s22 }
  0x1b   : > { %s1767_s7 = scalar_lea.vmem %s2452_s0, %s1365_s30  ;;  %s2378_s29 = scalar_lea.hbm %s2455_s3, %s1398_s21 }
  0x1c   : > { %v1770_v1 = vld [vmem:[%s1767_s7 + $0x10] sm:$0xff]  ;;  %v1773_v2 = vld [vmem:[%s1767_s7] sm:$0xff]  ;;  %v1778_v3 = vld [vmem:[%s1767_s7 + $0x18] sm:$0xff]  ;;  %s1170_s30 = scalar_lea.sflag [#allocation3], %s2169_s10  ;;  %s1567_s5 = scalar_lea.vmem %s2380_s22, 2048 }
  0x1d   : > { %285 = vperm.xlu1 %1560, %v1770_v1   ;;  %275 = vperm.xlu0 %1559, %v1773_v2   ;;  %v1781_v4 = vld [vmem:[%s1767_s7 + $0x8] sm:$0xff]  ;;  %v1789_v6 = vld [vmem:[%s1767_s7 + $0x20] sm:$0xff]  ;;  %v1794_v7 = vld [vmem:[%s1767_s7 + $0x38] sm:$0xff]  ;;  %p1568_p12 = scmp.ne.s32.totalorder %s2380_s22, %s1567_s5 }
  0x1e   : > { %v1786_v5 = vld [vmem:[%s1767_s7 + $0x28] sm:$0xff]  ;;  %v1797_v8 = vld [vmem:[%s1767_s7 + $0x30] sm:$0xff]  ;;  %v1805_v10 = vld [vmem:[%s1767_s7 + $0x40] sm:$0xff] }
  0x1f   : > { %v1802_v9 = vld [vmem:[%s1767_s7 + $0x48] sm:$0xff]  ;;  %v1810_v11 = vld [vmem:[%s1767_s7 + $0x58] sm:$0xff]  ;;  %v1813_v12 = vld [vmem:[%s1767_s7 + $0x50] sm:$0xff]  ;;  %p1569_p13 = pnand %p1568_p12, %p1747_p4 }
  0x20   : > { %v1818_v13 = vld [vmem:[%s1767_s7 + $0x68] sm:$0xff]  ;;  %v1821_v14 = vld [vmem:[%s1767_s7 + $0x60] sm:$0xff]  ;;  %v1826_v15 = vld [vmem:[%s1767_s7 + $0x78] sm:$0xff] }
  0x21   : > { %290 = vperm.xlu1 %1560, %v1778_v3   ;;  %280 = vperm.xlu0 %1559, %v1781_v4   ;;  %v1829_v16 = vld [vmem:[%s1767_s7 + $0x70] sm:$0xff]  ;;  %v1834_v17 = vld [vmem:[%s1767_s7 + $0x88] sm:$0xff]  ;;  %v1837_v18 = vld [vmem:[%s1767_s7 + $0x80] sm:$0xff]  ;;  %p1570_p0 = pneg %p1569_p13 }
  0x22   : > { %v1842_v19 = vld [vmem:[%s1767_s7 + $0x98] sm:$0xff]  ;;  %v1845_v20 = vld [vmem:[%s1767_s7 + $0x90] sm:$0xff]  ;;  %v1850_v21 = vld [vmem:[%s1767_s7 + $0xa8] sm:$0xff] }
  0x23   : > { %v1853_v22 = vld [vmem:[%s1767_s7 + $0xa0] sm:$0xff]  ;;  %v1858_v23 = vld [vmem:[%s1767_s7 + $0xb8] sm:$0xff]  ;;  %v1861_v24 = vld [vmem:[%s1767_s7 + $0xb0] sm:$0xff] }
  0x24   : > { %v1866_v25 = vld [vmem:[%s1767_s7 + $0xc8] sm:$0xff]  ;;  %v1869_v26 = vld [vmem:[%s1767_s7 + $0xc0] sm:$0xff]  ;;  %v1874_v27 = vld [vmem:[%s1767_s7 + $0xd8] sm:$0xff] }
  0x25   : > { %300 = vperm.xlu1 %1560, %v1786_v5   ;;  %295 = vperm.xlu0 %1559, %v1789_v6   ;;  %v1877_v28 = vld [vmem:[%s1767_s7 + $0xd0] sm:$0xff]  ;;  %v1882_v29 = vld [vmem:[%s1767_s7 + $0xe8] sm:$0xff]  ;;  %v1885_v30 = vld [vmem:[%s1767_s7 + $0xe0] sm:$0xff] }
  0x26   : > { %v1890_v31 = vld [vmem:[%s1767_s7 + $0xf8] sm:$0xff]  ;;  %v1893_v32 = vld [vmem:[%s1767_s7 + $0xf0] sm:$0xff]  ;;  %s1571_s7 = sshll.u32 %s1678_s6, 4  ;;  %s1572_s7 = int_to_ptr.vmem [resolvable:$false] %s1571_s7 }
  0x27   : > { %s1573_s8 = scalar_lea.vmem %s1572_s7, 4096  ;;  %p1574_p1 = scmp.lt.s32.totalorder %s2380_s22, %s1572_s7 }
  0x28   : > { %p1575_p2 = scmp.lt.s32.totalorder %s1573_s8, %s1567_s5 }
  0x29   : > { %310 = vperm.xlu1 %1560, %v1794_v7   ;;  %305 = vperm.xlu0 %1559, %v1797_v8  }
  0x2a   : > { %p1576_p3 = por %p1575_p2, %p1574_p1 }
  0x2c   : > { %p1577_p5 = pnand %p1576_p3, %p1570_p0 }
  0x2d   : > { %320 = vperm.xlu1 %1560, %v1802_v9   ;;  %315 = vperm.xlu0 %1559, %v1805_v10  }
  0x31   : > { %330 = vperm.xlu1 %1560, %v1810_v11   ;;  %325 = vperm.xlu0 %1559, %v1813_v12  }
  0x35   : > { %340 = vperm.xlu1 %1560, %v1818_v13   ;;  %335 = vperm.xlu0 %1559, %v1821_v14  }
  0x39   : > { %350 = vperm.xlu1 %1560, %v1826_v15   ;;  %345 = vperm.xlu0 %1559, %v1829_v16  }
  0x3d   : > { %360 = vperm.xlu1 %1560, %v1834_v17   ;;  %355 = vperm.xlu0 %1559, %v1837_v18  }
  0x41   : > { %370 = vperm.xlu1 %1560, %v1842_v19   ;;  %365 = vperm.xlu0 %1559, %v1845_v20  }
  0x45   : > { %380 = vperm.xlu1 %1560, %v1850_v21   ;;  %375 = vperm.xlu0 %1559, %v1853_v22  }
  0x49   : > { %390 = vperm.xlu1 %1560, %v1858_v23   ;;  %385 = vperm.xlu0 %1559, %v1861_v24  }
  0x4d   : > { %400 = vperm.xlu1 %1560, %v1866_v25   ;;  %395 = vperm.xlu0 %1559, %v1869_v26  }
  0x51   : > { %410 = vperm.xlu1 %1560, %v1874_v27   ;;  %405 = vperm.xlu0 %1559, %v1877_v28  }
  0x55   : > { %420 = vperm.xlu1 %1560, %v1882_v29   ;;  %415 = vperm.xlu0 %1559, %v1885_v30  }
  0x59   : > { %430 = vperm.xlu1 %1560, %v1890_v31   ;;  %425 = vperm.xlu0 %1559, %v1893_v32  }
  0x5d   : > { %1562 = vset.pattern.permute.xlu1 %v1676_v33  ;;  %1561 = vset.pattern.permute.xlu0 %v1676_v33 }
  0x5e   : > { %474 = vperm.xlu1 %1562, %v1781_v4   ;;  %470 = vperm.xlu0 %1561, %v1773_v2  }
  0x62   : > { %478 = vperm.xlu1 %1562, %v1770_v1   ;;  %482 = vperm.xlu0 %1561, %v1778_v3  }
  0x66   : > { %486 = vperm.xlu1 %1562, %v1789_v6   ;;  %490 = vperm.xlu0 %1561, %v1786_v5  }
  0x6a   : > { %494 = vperm.xlu1 %1562, %v1797_v8   ;;  %498 = vperm.xlu0 %1561, %v1794_v7  }
  0x6e   : > { %502 = vperm.xlu1 %1562, %v1805_v10   ;;  %506 = vperm.xlu0 %1561, %v1802_v9  }
  0x72   : > { %510 = vperm.xlu1 %1562, %v1813_v12   ;;  %514 = vperm.xlu0 %1561, %v1810_v11  }
  0x76   : > { %518 = vperm.xlu1 %1562, %v1821_v14   ;;  %522 = vperm.xlu0 %1561, %v1818_v13  }
  0x7a   : > { %526 = vperm.xlu1 %1562, %v1829_v16   ;;  %530 = vperm.xlu0 %1561, %v1826_v15  }
  0x7e   : > { %534 = vperm.xlu1 %1562, %v1837_v18   ;;  %538 = vperm.xlu0 %1561, %v1834_v17  }
  0x82   : > { %542 = vperm.xlu1 %1562, %v1845_v20   ;;  %546 = vperm.xlu0 %1561, %v1842_v19  }
  0x86   : > { %550 = vperm.xlu1 %1562, %v1853_v22   ;;  %554 = vperm.xlu0 %1561, %v1850_v21  }
  0x8a   : > { %558 = vperm.xlu1 %1562, %v1861_v24   ;;  %562 = vperm.xlu0 %1561, %v1858_v23  }
  0x8e   : > { %566 = vperm.xlu1 %1562, %v1869_v26   ;;  %570 = vperm.xlu0 %1561, %v1866_v25  }
  0x92   : > { %574 = vperm.xlu1 %1562, %v1877_v28   ;;  %578 = vperm.xlu0 %1561, %v1874_v27  }
  0x96   : > { %1563 = vset.pattern.permute.xlu1 %v1677_v34  ;;  %1564 = vset.pattern.permute.xlu0 %v1677_v34 }
  0x97   : > { %666 = vperm.xlu1 %1563, %v1773_v2   ;;  %670 = vperm.xlu0 %1564, %v1781_v4  }
  0x98   : > { %v1931_v35 = vpop.permute.xlu1 %285  ;;  %v1933_v36 = vpop.permute.xlu0 %275 }
  0x9b   : > { %674 = vperm.xlu1 %1563, %v1770_v1   ;;  %682 = vperm.xlu0 %1564, %v1789_v6  }
  0x9c   : > { %v1937_v37 = vpop.permute.xlu1 %290  ;;  %v1939_v38 = vpop.permute.xlu0 %280 }
  0x9f   : > { %678 = vperm.xlu1 %1563, %v1778_v3   ;;  %690 = vperm.xlu0 %1564, %v1797_v8   ;;  %v2016_v3 = vrot.slane %v272_v0, %v435_v63  ;;  %v599_v63 = vsub.s32 1, %v434_v60 }
  0xa0   : > { %v1943_v39 = vpop.permute.xlu1 %300  ;;  %v1945_v40 = vpop.permute.xlu0 %295 }
  0xa3   : > { %686 = vperm.xlu1 %1563, %v1786_v5   ;;  %698 = vperm.xlu0 %1564, %v1805_v10  }
  0xa4   : > { %v1949_v41 = vpop.permute.xlu1 %310  ;;  %v1951_v42 = vpop.permute.xlu0 %305 }
  0xa7   : > { %694 = vperm.xlu1 %1563, %v1794_v7   ;;  %706 = vperm.xlu0 %1564, %v1813_v12  }
  0xa8   : > { %v1955_v43 = vpop.permute.xlu1 %320  ;;  %v1957_v44 = vpop.permute.xlu0 %315 }
  0xab   : > { %702 = vperm.xlu1 %1563, %v1802_v9   ;;  %714 = vperm.xlu0 %1564, %v1821_v14  }
  0xac   : > { %v1961_v45 = vpop.permute.xlu1 %330  ;;  %v1963_v46 = vpop.permute.xlu0 %325 }
  0xaf   : > { %710 = vperm.xlu1 %1563, %v1810_v11   ;;  %722 = vperm.xlu0 %1564, %v1829_v16  }
  0xb0   : > { %v1967_v47 = vpop.permute.xlu1 %340  ;;  %v1969_v48 = vpop.permute.xlu0 %335 }
  0xb3   : > { %718 = vperm.xlu1 %1563, %v1818_v13   ;;  %730 = vperm.xlu0 %1564, %v1837_v18  }
  0xb4   : > { %v1973_v49 = vpop.permute.xlu1 %350  ;;  %v1975_v50 = vpop.permute.xlu0 %345 }
  0xb7   : > { %726 = vperm.xlu1 %1563, %v1826_v15   ;;  %738 = vperm.xlu0 %1564, %v1845_v20  }
  0xb8   : > { %v1979_v51 = vpop.permute.xlu1 %360  ;;  %v1981_v52 = vpop.permute.xlu0 %355 }
  0xbb   : > { %734 = vperm.xlu1 %1563, %v1834_v17   ;;  %746 = vperm.xlu0 %1564, %v1853_v22  }
  0xbc   : > { %v1985_v53 = vpop.permute.xlu1 %370  ;;  %v1987_v54 = vpop.permute.xlu0 %365 }
  0xbf   : > { %742 = vperm.xlu1 %1563, %v1842_v19   ;;  %754 = vperm.xlu0 %1564, %v1861_v24  }
  0xc0   : > { %v1991_v55 = vpop.permute.xlu1 %380  ;;  %v1993_v56 = vpop.permute.xlu0 %375 }
  0xc3   : > { %750 = vperm.xlu1 %1563, %v1850_v21   ;;  %762 = vperm.xlu0 %1564, %v1869_v26  }
  0xc4   : > { %v1997_v58 = vpop.permute.xlu1 %390  ;;  %v1999_v59 = vpop.permute.xlu0 %385 }
  0xc7   : > { %758 = vperm.xlu1 %1563, %v1858_v23   ;;  %770 = vperm.xlu0 %1564, %v1877_v28  }
  0xc8   : > { %v2003_v61 = vpop.permute.xlu1 %400  ;;  %v2005_v62 = vpop.permute.xlu0 %395 }
  0xcb   : > { %766 = vperm.xlu1 %1563, %v1866_v25   ;;  %774 = vperm.xlu0 %1564, %v1874_v27  }
  0xcc   : > { %v2012_v1 = vpop.permute.xlu1 %410  ;;  %v2014_v2 = vpop.permute.xlu0 %405 }
  0xcf   : > { %1565 = vset.pattern.permute.xlu1 %v1676_v33  ;;  %778 = vperm.xlu0 %1564, %v1885_v30  }
  0xd0   : > { %v421_v4 = vpop.permute.xlu1 %420  ;;  %582 = vperm.xlu1 %1565, %v1885_v30   ;;  %v416_v5 = vpop.permute.xlu0 %415 }
  0xd1   : > { %v2022_v6 = vmul.f32 %v2016_v3, %v421_v4  ;;  %v2025_v7 = vmul.f32 %v2016_v3, %v416_v5  ;;  %v795_v4 = vsub.s32 2, %v434_v60  ;;  %v438_v60 = vmul.f32 %v2016_v3, %v1939_v38 }
  0xd2   : > { %v2118_v38 = vmul.f32 %v2016_v3, %v1955_v43  ;;  %v2136_v43 = vmul.f32 %v2016_v3, %v1967_v47  ;;  %v2156_v47 = vmul.f32 %v2016_v3, %v1981_v52 }
  0xd3   : > { %2459 = vst [vmem:[#allocation8_spill] sm:$0xff] %v2022_v6  ;;  %2460 = vst [vmem:[#allocation9_spill] sm:$0xff] %v2025_v7  ;;  %782 = vperm.xlu0 %1564, %v1882_v29   ;;  %v437_v6 = vmul.f32 %v2016_v3, %v1933_v36  ;;  %v2094_v7 = vmul.f32 %v2016_v3, %v1937_v37  ;;  %v2110_v36 = vmul.f32 %v2016_v3, %v1949_v41 }
  0xd4   : > { %v431_v8 = vpop.permute.xlu1 %430  ;;  %586 = vperm.xlu1 %1565, %v1882_v29   ;;  %v426_v9 = vpop.permute.xlu0 %425  ;;  %v2114_v37 = vmul.f32 %v2016_v3, %v1951_v42  ;;  %v2128_v41 = vmul.f32 %v2016_v3, %v1961_v45  ;;  %v2132_v42 = vmul.f32 %v2016_v3, %v1963_v46  ;;  %v2148_v45 = vmul.f32 %v2016_v3, %v1975_v50 }
  0xd5   : > { %v2030_v10 = vmul.f32 %v2016_v3, %v431_v8  ;;  %v2033_v11 = vmul.f32 %v2016_v3, %v426_v9  ;;  %v2084_v9 = vrot.slane %v272_v0, %v599_v63  ;;  %v2122_v63 = vmul.f32 %v2016_v3, %v1957_v44 }
  0xd6   : > { %v2140_v44 = vmul.f32 %v2016_v3, %v1969_v48  ;;  %v2152_v46 = vmul.f32 %v2016_v3, %v1979_v51  ;;  %v2160_v48 = vmul.f32 %v2016_v3, %v1985_v53 }
  0xd7   : > { %2461 = vst [vmem:[#allocation10_spill] sm:$0xff] %v2030_v10  ;;  %2462 = vst [vmem:[#allocation11_spill] sm:$0xff] %v2033_v11  ;;  %786 = vperm.xlu0 %1564, %v1893_v32   ;;  %v2086_v10 = vrot.slane %v272_v0, %v795_v4  ;;  %v439_v11 = vmul.f32 %v2016_v3, %v1931_v35  ;;  %v2104_v0 = vmul.f32 %v2016_v3, %v1943_v39 }
  0xd8   : > { %590 = vperm.xlu1 %1565, %v1893_v32   ;;  %v441_v35 = vmul.f32 %v2016_v3, %v1945_v40 }
  0xd9   : > { %v475_v12 = vpop.permute.xlu1 %474  ;;  %v471_v13 = vpop.permute.xlu0 %470 }
  0xda   : > { %v602_v39 = vmul.f32 %v2084_v9, %v475_v12  ;;  %v601_v40 = vmul.f32 %v2084_v9, %v471_v13  ;;  %v2144_v12 = vmul.f32 %v2016_v3, %v1973_v49  ;;  %v2164_v49 = vmul.f32 %v2016_v3, %v1987_v54 }
  0xdb   : > { %v2179_v54 = vmul.f32 %v2016_v3, %v1993_v56  ;;  %v2200_v56 = vmul.f32 %v2016_v3, %v2005_v62 }
  0xdc   : > { %594 = vperm.xlu1 %1565, %v1890_v31   ;;  %v634_v51 = vadd.f32 %v602_v39, %v438_v60  ;;  %v633_v52 = vadd.f32 %v601_v40, %v437_v6  ;;  %v2192_v6 = vld [vmem:[%s2454_s2] ss:$0 sm:$0xff] }
  0xdd   : > { %v479_v14 = vpop.permute.xlu1 %478  ;;  %v2038_v15 = vpop.permute.xlu0 %482 }
  0xde   : > { %v603_v13 = vmul.f32 %v2084_v9, %v479_v14  ;;  %v2183_v14 = vmul.f32 %v2016_v3, %v1997_v58 }
  0xe0   : > { %1566 = vset.pattern.permute.xlu1 %v1677_v34  ;;  %2468 = vst [vmem:[#allocation17_spill] sm:$0xff] %v2183_v14  ;;  %v635_v60 = vadd.f32 %v603_v13, %v439_v11 }
  0xe1   : > { %v487_v16 = vpop.permute.xlu1 %486  ;;  %790 = vperm.xlu1 %1566, %v1890_v31   ;;  %v2042_v17 = vpop.permute.xlu0 %490 }
  0xe2   : > { %v605_v50 = vmul.f32 %v2084_v9, %v487_v16  ;;  %v2187_v16 = vmul.f32 %v2016_v3, %v1999_v59  ;;  %v604_v59 = vmul.f32 %v2084_v9, %v2038_v15  ;;  %v606_v40 = vmul.f32 %v2084_v9, %v2042_v17 }
  0xe4   : > { %v637_v39 = vadd.f32 %v605_v50, %v441_v35 }
  0xe5   : > { %v2044_v18 = vpop.permute.xlu1 %494  ;;  %v2046_v19 = vpop.permute.xlu0 %498 }
  0xe6   : > { %v607_v11 = vmul.f32 %v2084_v9, %v2044_v18  ;;  %v608_v15 = vmul.f32 %v2084_v9, %v2046_v19  ;;  %v2225_v18 = vmul.f32 %v2016_v3, %v2014_v2 }
  0xe8   : > { %v639_v2 = vadd.f32 %v607_v11, %v2114_v37 }
  0xe9   : > { %v2048_v20 = vpop.permute.xlu1 %502  ;;  %v2050_v21 = vpop.permute.xlu0 %506 }
  0xea   : > { %v609_v35 = vmul.f32 %v2084_v9, %v2048_v20  ;;  %v610_v17 = vmul.f32 %v2084_v9, %v2050_v21  ;;  %v636_v20 = vadd.f32 %v604_v59, %v2094_v7  ;;  %v640_v7 = vadd.f32 %v608_v15, %v2110_v36 }
  0xec   : > { %v641_v59 = vadd.f32 %v609_v35, %v2122_v63 }
  0xed   : > { %v2052_v22 = vpop.permute.xlu1 %510  ;;  %v2054_v23 = vpop.permute.xlu0 %514 }
  0xee   : > { %v611_v21 = vmul.f32 %v2084_v9, %v2052_v22  ;;  %v642_v22 = vadd.f32 %v610_v17, %v2118_v38 }
  0xf0   : > { %v643_v11 = vadd.f32 %v611_v21, %v2132_v42 }
  0xf1   : > { %v2056_v24 = vpop.permute.xlu1 %518  ;;  %v2058_v25 = vpop.permute.xlu0 %522 }
  0xf2   : > { %v613_v38 = vmul.f32 %v2084_v9, %v2056_v24 }
  0xf5   : > { %v2060_v26 = vpop.permute.xlu1 %526  ;;  %v2062_v27 = vpop.permute.xlu0 %530 }
  0xf6   : > { %v615_v17 = vmul.f32 %v2084_v9, %v2060_v26 }
  0xf9   : > { %v2064_v28 = vpop.permute.xlu1 %534  ;;  %v2066_v29 = vpop.permute.xlu0 %538 }
  0xfd   : > { %v2068_v30 = vpop.permute.xlu1 %542  ;;  %v2070_v31 = vpop.permute.xlu0 %546 }
 0x101   : > { %v2072_v32 = vpop.permute.xlu1 %550  ;;  %v2074_v33 = vpop.permute.xlu0 %554 }
 0x105   : > { %v2076_v34 = vpop.permute.xlu1 %558  ;;  %v2078_v57 = vpop.permute.xlu0 %562 }
 0x106   : > { %2463 = vst [vmem:[#allocation12_spill] sm:$0xff] %v2078_v57  ;;  %v2175_v57 = vmul.f32 %v2016_v3, %v1991_v55  ;;  %v2196_v55 = vmul.f32 %v2016_v3, %v2003_v61 }
 0x108   : > { %2469 = vst [vmem:[#allocation18_spill] sm:$0xff] %v2196_v55 }
 0x109   : > { %v2080_v5 = vpop.permute.xlu1 %566  ;;  %v2082_v8 = vpop.permute.xlu0 %570 }
 0x10a   : > { %2464 = vst [vmem:[#allocation13_spill] sm:$0xff] %v2080_v5  ;;  %2465 = vst [vmem:[#allocation14_spill] sm:$0xff] %v2082_v8 }
 0x10d   : > { %v2098_v5 = vpop.permute.xlu1 %574  ;;  %v2100_v8 = vpop.permute.xlu0 %578 }
 0x10e   : > { %2466 = vst [vmem:[#allocation15_spill] sm:$0xff] %v2098_v5  ;;  %2467 = vst [vmem:[#allocation16_spill] sm:$0xff] %v2100_v8 }
 0x112   : > { %v667_v4 = vpop.permute.xlu1 %666  ;;  %v671_v8 = vpop.permute.xlu0 %670 }
 0x113   : > { %v797_v5 = vmul.f32 %v2086_v10, %v667_v4  ;;  %v798_v53 = vmul.f32 %v2086_v10, %v671_v8 }
 0x115   : > { %v829_v8 = vadd.f32 %v797_v5, %v633_v52  ;;  %v830_v58 = vadd.f32 %v798_v53, %v634_v51  ;;  %v2221_v53 = vmul.f32 %v2016_v3, %v2012_v1 }
 0x116   : > { %v675_v4 = vpop.permute.xlu1 %674  ;;  %v683_v14 = vpop.permute.xlu0 %682 }
 0x117   : > { %v868_v61 = vadd.f32 %v2192_v6, %v829_v8  ;;  %v869_v55 = vadd.f32 %v2192_v6, %v830_v58  ;;  %v799_v62 = vmul.f32 %v2086_v10, %v675_v4  ;;  %v801_v5 = vmul.f32 %v2086_v10, %v683_v14 }
 0x118   : > { %v638_v4 = vadd.f32 %v606_v40, %v2104_v0 }
 0x119   : > { %v1097_v13 = vmul.f32 %v868_v61, %v868_v61  ;;  %v1402_v50 = vpack.c.bf16 %v869_v55, %v868_v61  ;;  %v1060_v51 = vadd.f32 %v869_v55, %v868_v61  ;;  %v1098_v52 = vmul.f32 %v869_v55, %v869_v55 }
 0x11a   : > { %v831_v14 = vadd.f32 %v799_v62, %v635_v60  ;;  %v833_v19 = vadd.f32 %v801_v5, %v637_v39  ;;  %v679_v8 = vpop.permute.xlu1 %678  ;;  %v691_v58 = vpop.permute.xlu0 %690  ;;  %v612_v61 = vmul.f32 %v2084_v9, %v2054_v23  ;;  %v614_v23 = vmul.f32 %v2084_v9, %v2058_v25 }
 0x11b   : > { %1403 = vst [vmem:[%s2230_s14] sm:$0xff] %v1402_v50   ;;  %v1129_v55 = vadd.f32 %v1098_v52, %v1097_v13  ;;  %v800_v1 = vmul.f32 %v2086_v10, %v679_v8  ;;  %v803_v60 = vmul.f32 %v2086_v10, %v691_v58 }
 0x11c   : > { %v870_v3 = vadd.f32 %v2192_v6, %v831_v14  ;;  %v872_v0 = vadd.f32 %v2192_v6, %v833_v19  ;;  %v644_v52 = vadd.f32 %v612_v61, %v2128_v41  ;;  %v2260_v26 = vadd.f32 %v614_v23, %v2136_v43 }
 0x11d   : > { %v832_v39 = vadd.f32 %v800_v1, %v636_v20  ;;  %v835_v35 = vadd.f32 %v803_v60, %v639_v2  ;;  %v645_v1 = vadd.f32 %v613_v38, %v2140_v44 }
 0x11e   : > { %v1061_v62 = vadd.f32 %v1060_v51, %v870_v3  ;;  %v1099_v5 = vmul.f32 %v870_v3, %v870_v3  ;;  %v687_v40 = vpop.permute.xlu1 %686  ;;  %v699_v37 = vpop.permute.xlu0 %698  ;;  %v1101_v14 = vmul.f32 %v872_v0, %v872_v0 }
 0x11f   : > { %v871_v13 = vadd.f32 %v2192_v6, %v832_v39  ;;  %v802_v36 = vmul.f32 %v2086_v10, %v687_v40  ;;  %v805_v63 = vmul.f32 %v2086_v10, %v699_v37  ;;  %v874_v2 = vadd.f32 %v2192_v6, %v835_v35 }
 0x120   : > { %v1130_v15 = vadd.f32 %v1129_v55, %v1099_v5  ;;  %v617_v39 = vmul.f32 %v2084_v9, %v2064_v28  ;;  %v618_v35 = vmul.f32 %v2084_v9, %v2066_v29  ;;  %v619_v29 = vmul.f32 %v2084_v9, %v2068_v30 }
 0x121   : > { %v1407_v50 = vpack.c.bf16 %v871_v13, %v870_v3  ;;  %v1062_v42 = vadd.f32 %v1061_v62, %v871_v13  ;;  %v1100_v51 = vmul.f32 %v871_v13, %v871_v13  ;;  %v834_v19 = vadd.f32 %v802_v36, %v638_v4 }
 0x122   : > { %v837_v8 = vadd.f32 %v805_v63, %v641_v59  ;;  %v695_v58 = vpop.permute.xlu1 %694  ;;  %v707_v20 = vpop.permute.xlu0 %706  ;;  %v647_v4 = vadd.f32 %v615_v17, %v2148_v45  ;;  %v616_v3 = vmul.f32 %v2084_v9, %v2062_v27  ;;  %v1103_v36 = vmul.f32 %v874_v2, %v874_v2 }
 0x123   : > { %1479 = vst [vmem:[%s2230_s14 + $0x8] sm:$0xff] %v1407_v50   ;;  %v1131_v24 = vadd.f32 %v1130_v15, %v1100_v51  ;;  %v1063_v21 = vadd.f32 %v1062_v42, %v872_v0  ;;  %v804_v25 = vmul.f32 %v2086_v10, %v695_v58  ;;  %v807_v55 = vmul.f32 %v2086_v10, %v707_v20 }
 0x124   : > { %v873_v41 = vadd.f32 %v2192_v6, %v834_v19  ;;  %v876_v40 = vadd.f32 %v2192_v6, %v837_v8  ;;  %v648_v28 = vadd.f32 %v616_v3, %v2144_v12  ;;  %v649_v15 = vadd.f32 %v617_v39, %v2156_v47 }
 0x125   : > { %v1132_v60 = vadd.f32 %v1131_v24, %v1101_v14  ;;  %v836_v59 = vadd.f32 %v804_v25, %v640_v7  ;;  %v839_v13 = vadd.f32 %v807_v55, %v643_v11  ;;  %v650_v25 = vadd.f32 %v618_v35, %v2152_v46 }
 0x126   : > { %v1412_v61 = vpack.c.bf16 %v873_v41, %v872_v0  ;;  %v1064_v44 = vadd.f32 %v1063_v21, %v873_v41  ;;  %v1102_v62 = vmul.f32 %v873_v41, %v873_v41  ;;  %v703_v43 = vpop.permute.xlu1 %702  ;;  %v715_v5 = vpop.permute.xlu0 %714  ;;  %v1105_v51 = vmul.f32 %v876_v40, %v876_v40 }
 0x127   : > { %v875_v37 = vadd.f32 %v2192_v6, %v836_v59  ;;  %v806_v45 = vmul.f32 %v2086_v10, %v703_v43  ;;  %v809_v63 = vmul.f32 %v2086_v10, %v715_v5  ;;  %v878_v14 = vadd.f32 %v2192_v6, %v839_v13 }
 0x128   : > { %1480 = vst [vmem:[%s2230_s14 + $0x10] sm:$0xff] %v1412_v61   ;;  %v1133_v27 = vadd.f32 %v1132_v60, %v1102_v62  ;;  %v1065_v7 = vadd.f32 %v1064_v44, %v874_v2  ;;  %v620_v55 = vmul.f32 %v2084_v9, %v2070_v31  ;;  %v651_v31 = vadd.f32 %v619_v29, %v2164_v49 }
 0x129   : > { %v1417_v0 = vpack.c.bf16 %v875_v37, %v874_v2  ;;  %v1104_v38 = vmul.f32 %v875_v37, %v875_v37  ;;  %v838_v23 = vadd.f32 %v806_v45, %v642_v22  ;;  %v841_v58 = vadd.f32 %v809_v63, %v645_v1 }
 0x12a   : > { %v1066_v11 = vadd.f32 %v1065_v7, %v875_v37  ;;  %v1134_v17 = vadd.f32 %v1133_v27, %v1103_v36  ;;  %v711_v50 = vpop.permute.xlu1 %710  ;;  %v723_v42 = vpop.permute.xlu0 %722  ;;  %v1107_v59 = vmul.f32 %v878_v14, %v878_v14  ;;  %v622_v37 = vmul.f32 %v2084_v9, %v2074_v33 }
 0x12b   : > { %1481 = vst [vmem:[%s2230_s14 + $0x18] sm:$0xff] %v1417_v0   ;;  %v877_v19 = vadd.f32 %v2192_v6, %v838_v23  ;;  %v808_v12 = vmul.f32 %v2086_v10, %v711_v50  ;;  %v811_v47 = vmul.f32 %v2086_v10, %v723_v42  ;;  %v652_v33 = vadd.f32 %v620_v55, %v2160_v48  ;;  %v2471_v55 = vld [vmem:[#allocation13_spill] sm:$0xff] }
 0x12c   : > { %v1135_v8 = vadd.f32 %v1134_v17, %v1104_v38  ;;  %v1067_v22 = vadd.f32 %v1066_v11, %v876_v40  ;;  %v654_v50 = vadd.f32 %v622_v37, %v2175_v57  ;;  %v623_v57 = vmul.f32 %v2084_v9, %v2076_v34 }
 0x12d   : > { %v1422_v20 = vpack.c.bf16 %v877_v19, %v876_v40  ;;  %v1106_v24 = vmul.f32 %v877_v19, %v877_v19  ;;  %v840_v21 = vadd.f32 %v808_v12, %v644_v52  ;;  %v880_v52 = vadd.f32 %v2192_v6, %v841_v58 }
 0x12e   : > { %v1068_v2 = vadd.f32 %v1067_v22, %v877_v19  ;;  %v1136_v41 = vadd.f32 %v1135_v8, %v1105_v51  ;;  %v719_v3 = vpop.permute.xlu1 %718  ;;  %v731_v60 = vpop.permute.xlu0 %730  ;;  %v843_v44 = vadd.f32 %v811_v47, %v647_v4  ;;  %v621_v40 = vmul.f32 %v2084_v9, %v2072_v32 }
 0x12f   : > { %1482 = vst [vmem:[%s2230_s14 + $0x20] sm:$0xff] %v1422_v20   ;;  %v879_v1 = vadd.f32 %v2192_v6, %v840_v21  ;;  %v810_v39 = vmul.f32 %v2086_v10, %v719_v3  ;;  %v813_v30 = vmul.f32 %v2086_v10, %v731_v60 }
 0x130   : > { %v1137_v61 = vadd.f32 %v1136_v41, %v1106_v24  ;;  %v1069_v46 = vadd.f32 %v1068_v2, %v878_v14  ;;  %v882_v32 = vadd.f32 %v2192_v6, %v843_v44  ;;  %v653_v17 = vadd.f32 %v621_v40, %v2179_v54  ;;  %v2470_v24 = vld [vmem:[#allocation12_spill] sm:$0xff] }
 0x131   : > { %v1427_v62 = vpack.c.bf16 %v879_v1, %v878_v14  ;;  %v1108_v43 = vmul.f32 %v879_v1, %v879_v1  ;;  %v842_v5 = vadd.f32 %v810_v39, %v2260_v26  ;;  %v845_v4 = vadd.f32 %v813_v30, %v649_v15 }
 0x132   : > { %v1070_v13 = vadd.f32 %v1069_v46, %v879_v1  ;;  %v1138_v45 = vadd.f32 %v1137_v61, %v1107_v59  ;;  %v727_v36 = vpop.permute.xlu1 %726  ;;  %v739_v27 = vpop.permute.xlu0 %738  ;;  %v1109_v26 = vmul.f32 %v880_v52, %v880_v52  ;;  %v1111_v48 = vmul.f32 %v882_v32, %v882_v32 }
 0x133   : > { %1483 = vst [vmem:[%s2230_s14 + $0x28] sm:$0xff] %v1427_v62   ;;  %v881_v7 = vadd.f32 %v2192_v6, %v842_v5  ;;  %v812_v49 = vmul.f32 %v2086_v10, %v727_v36  ;;  %v815_v63 = vmul.f32 %v2086_v10, %v739_v27  ;;  %v884_v19 = vadd.f32 %v2192_v6, %v845_v4  ;;  %v2472_v5 = vld [vmem:[#allocation17_spill] sm:$0xff] }
 0x134   : > { %v1139_v0 = vadd.f32 %v1138_v45, %v1108_v43  ;;  %v1071_v38 = vadd.f32 %v1070_v13, %v880_v52  ;;  %v624_v21 = vmul.f32 %v2084_v9, %v2470_v24  ;;  %v625_v2 = vmul.f32 %v2084_v9, %v2471_v55 }
 0x135   : > { %v1432_v23 = vpack.c.bf16 %v881_v7, %v880_v52  ;;  %v1110_v35 = vmul.f32 %v881_v7, %v881_v7  ;;  %v844_v11 = vadd.f32 %v812_v49, %v648_v28  ;;  %v847_v8 = vadd.f32 %v815_v63, %v651_v31 }
 0x136   : > { %v1072_v15 = vadd.f32 %v1071_v38, %v881_v7  ;;  %v1140_v42 = vadd.f32 %v1139_v0, %v1109_v26  ;;  %v735_v51 = vpop.permute.xlu1 %734  ;;  %v747_v14 = vpop.permute.xlu0 %746  ;;  %v1113_v1 = vmul.f32 %v884_v19, %v884_v19  ;;  %v655_v44 = vadd.f32 %v623_v57, %v2187_v16  ;;  %v2473_v38 = vld [vmem:[#allocation15_spill] sm:$0xff] }
 0x137   : > { %1484 = vst [vmem:[%s2230_s14 + $0x30] sm:$0xff] %v1432_v23   ;;  %v883_v12 = vadd.f32 %v2192_v6, %v844_v11  ;;  %v814_v22 = vmul.f32 %v2086_v10, %v735_v51  ;;  %v817_v54 = vmul.f32 %v2086_v10, %v747_v14  ;;  %v886_v39 = vadd.f32 %v2192_v6, %v847_v8  ;;  %v2474_v11 = vld [vmem:[#allocation14_spill] sm:$0xff] }
 0x138   : > { %v1141_v58 = vadd.f32 %v1140_v42, %v1110_v35  ;;  %v1073_v28 = vadd.f32 %v1072_v15, %v882_v32  ;;  %v656_v40 = vadd.f32 %v624_v21, %v2472_v5  ;;  %v657_v37 = vadd.f32 %v625_v2, %v2200_v56  ;;  %v2476_v21 = vld [vmem:[#allocation18_spill] sm:$0xff] }
 0x139   : > { %v1437_v47 = vpack.c.bf16 %v883_v12, %v882_v32  ;;  %v1112_v29 = vmul.f32 %v883_v12, %v883_v12  ;;  %v846_v20 = vadd.f32 %v814_v22, %v650_v25  ;;  %v849_v52 = vadd.f32 %v817_v54, %v653_v17 }
 0x13a   : > { %v1074_v41 = vadd.f32 %v1073_v28, %v883_v12  ;;  %v1142_v3 = vadd.f32 %v1141_v58, %v1111_v48  ;;  %v743_v60 = vpop.permute.xlu1 %742  ;;  %v755_v59 = vpop.permute.xlu0 %754  ;;  %v1115_v7 = vmul.f32 %v886_v39, %v886_v39  ;;  %v627_v56 = vmul.f32 %v2084_v9, %v2473_v38  ;;  %v2475_v12 = vld [vmem:[#allocation16_spill] sm:$0xff] }
 0x13b   : > { %1485 = vst [vmem:[%s2230_s14 + $0x38] sm:$0xff] %v1437_v47   ;;  %v885_v30 = vadd.f32 %v2192_v6, %v846_v20  ;;  %v816_v34 = vmul.f32 %v2086_v10, %v743_v60  ;;  %v819_v46 = vmul.f32 %v2086_v10, %v755_v59  ;;  %v888_v26 = vadd.f32 %v2192_v6, %v849_v52 }
 0x13c   : > { %v1143_v25 = vadd.f32 %v1142_v3, %v1112_v29  ;;  %v1075_v61 = vadd.f32 %v1074_v41, %v884_v19  ;;  %v626_v17 = vmul.f32 %v2084_v9, %v2474_v11  ;;  %v628_v8 = vmul.f32 %v2084_v9, %v2475_v12 }
 0x13d   : > { %v1442_v31 = vpack.c.bf16 %v885_v30, %v884_v19  ;;  %v1114_v62 = vmul.f32 %v885_v30, %v885_v30  ;;  %v848_v43 = vadd.f32 %v816_v34, %v652_v33  ;;  %v851_v32 = vadd.f32 %v819_v46, %v655_v44 }
 0x13e   : > { %v1076_v13 = vadd.f32 %v1075_v61, %v885_v30  ;;  %v1144_v45 = vadd.f32 %v1143_v25, %v1113_v1  ;;  %v751_v36 = vpop.permute.xlu1 %750  ;;  %v763_v27 = vpop.permute.xlu0 %762  ;;  %v659_v47 = vadd.f32 %v627_v56, %v2225_v18  ;;  %v658_v55 = vadd.f32 %v626_v17, %v2476_v21  ;;  %v2477_v56 = vld [vmem:[#allocation9_spill] sm:$0xff]  ;;  %v2479_v21 = vld [vmem:[#allocation11_spill] sm:$0xff] }
 0x13f   : > { %1486 = vst [vmem:[%s2230_s14 + $0x40] sm:$0xff] %v1442_v31   ;;  %v887_v4 = vadd.f32 %v2192_v6, %v848_v43  ;;  %v818_v49 = vmul.f32 %v2086_v10, %v751_v36  ;;  %v821_v63 = vmul.f32 %v2086_v10, %v763_v27  ;;  %v890_v54 = vadd.f32 %v2192_v6, %v851_v32 }
 0x140   : > { %v1145_v16 = vadd.f32 %v1144_v45, %v1114_v62  ;;  %v1077_v0 = vadd.f32 %v1076_v13, %v886_v39  ;;  %v660_v34 = vadd.f32 %v628_v8, %v2221_v53  ;;  %v2478_v8 = vld [vmem:[#allocation8_spill] sm:$0xff] }
 0x141   : > { %v1447_v33 = vpack.c.bf16 %v887_v4, %v886_v39  ;;  %v1116_v23 = vmul.f32 %v887_v4, %v887_v4  ;;  %v850_v35 = vadd.f32 %v818_v49, %v654_v50  ;;  %v853_v51 = vadd.f32 %v821_v63, %v657_v37 }
 0x142   : > { %v1078_v15 = vadd.f32 %v1077_v0, %v887_v4  ;;  %v1146_v42 = vadd.f32 %v1145_v16, %v1115_v7  ;;  %v759_v14 = vpop.permute.xlu1 %758  ;;  %v771_v19 = vpop.permute.xlu0 %770  ;;  %v1117_v50 = vmul.f32 %v888_v26, %v888_v26  ;;  %v1119_v25 = vmul.f32 %v890_v54, %v890_v54 }
 0x143   : > { %1487 = vst [vmem:[%s2230_s14 + $0x48] sm:$0xff] %v1447_v33   ;;  %v889_v22 = vadd.f32 %v2192_v6, %v850_v35  ;;  %v820_v48 = vmul.f32 %v2086_v10, %v759_v14  ;;  %v823_v58 = vmul.f32 %v2086_v10, %v771_v19  ;;  %v892_v3 = vadd.f32 %v2192_v6, %v853_v51 }
 0x144   : > { %v1147_v28 = vadd.f32 %v1146_v42, %v1116_v23  ;;  %v1079_v57 = vadd.f32 %v1078_v15, %v888_v26 }
 0x145   : > { %v1452_v29 = vpack.c.bf16 %v889_v22, %v888_v26  ;;  %v1118_v20 = vmul.f32 %v889_v22, %v889_v22  ;;  %v852_v24 = vadd.f32 %v820_v48, %v656_v40  ;;  %v855_v39 = vadd.f32 %v823_v58, %v659_v47 }
 0x146   : > { %v1080_v2 = vadd.f32 %v1079_v57, %v889_v22  ;;  %v1148_v41 = vadd.f32 %v1147_v28, %v1117_v50  ;;  %v767_v60 = vpop.permute.xlu1 %766  ;;  %v775_v59 = vpop.permute.xlu0 %774  ;;  %v1121_v37 = vmul.f32 %v892_v3, %v892_v3 }
 0x147   : > { %1488 = vst [vmem:[%s2230_s14 + $0x50] sm:$0xff] %v1452_v29   ;;  %v891_v1 = vadd.f32 %v2192_v6, %v852_v24  ;;  %v822_v30 = vmul.f32 %v2086_v10, %v767_v60  ;;  %v824_v18 = vmul.f32 %v2086_v10, %v775_v59  ;;  %v894_v13 = vadd.f32 %v2192_v6, %v855_v39 }
 0x148   : > { %v1149_v61 = vadd.f32 %v1148_v41, %v1118_v20  ;;  %v1081_v52 = vadd.f32 %v1080_v2, %v890_v54 }
 0x149   : > { %v1457_v46 = vpack.c.bf16 %v891_v1, %v890_v54  ;;  %v1120_v44 = vmul.f32 %v891_v1, %v891_v1  ;;  %v854_v31 = vadd.f32 %v822_v30, %v658_v55  ;;  %v856_v5 = vadd.f32 %v824_v18, %v660_v34 }
 0x14a   : > { %v1082_v62 = vadd.f32 %v1081_v52, %v891_v1  ;;  %v1150_v43 = vadd.f32 %v1149_v61, %v1119_v25  ;;  %v779_v40 = vpop.permute.xlu0 %778  ;;  %v1123_v35 = vmul.f32 %v894_v13, %v894_v13  ;;  %v2480_v52 = vld [vmem:[#allocation10_spill] sm:$0xff] }
 0x14b   : > { %1489 = vst [vmem:[%s2230_s14 + $0x58] sm:$0xff] %v1457_v46   ;;  %v893_v45 = vadd.f32 %v2192_v6, %v854_v31  ;;  %v583_v36 = vpop.permute.xlu1 %582  ;;  %v895_v7 = vadd.f32 %v2192_v6, %v856_v5  ;;  %v825_v38 = vmul.f32 %v2086_v10, %v779_v40 }
 0x14c   : > { %v1151_v27 = vadd.f32 %v1150_v43, %v1120_v44  ;;  %v1083_v53 = vadd.f32 %v1082_v62, %v892_v3  ;;  %v629_v4 = vmul.f32 %v2084_v9, %v583_v36 }
 0x14d   : > { %v1462_v49 = vpack.c.bf16 %v893_v45, %v892_v3  ;;  %v1122_v63 = vmul.f32 %v893_v45, %v893_v45  ;;  %v1467_v0 = vpack.c.bf16 %v895_v7, %v894_v13  ;;  %v1124_v42 = vmul.f32 %v895_v7, %v895_v7 }
 0x14e   : > { %v1084_v16 = vadd.f32 %v1083_v53, %v893_v45  ;;  %v1152_v26 = vadd.f32 %v1151_v27, %v1121_v37  ;;  %v783_v32 = vpop.permute.xlu0 %782  ;;  %v661_v33 = vadd.f32 %v629_v4, %v2477_v56 }
 0x14f   : > { %1490 = vst [vmem:[%s2230_s14 + $0x60] sm:$0xff] %v1462_v49   ;;  %v587_v23 = vpop.permute.xlu1 %586  ;;  %1491 = vst [vmem:[%s2230_s14 + $0x68] sm:$0xff] %v1467_v0   ;;  %v826_v12 = vmul.f32 %v2086_v10, %v783_v32 }
 0x150   : > { %v1153_v11 = vadd.f32 %v1152_v26, %v1122_v63  ;;  %v1085_v17 = vadd.f32 %v1084_v16, %v894_v13  ;;  %v630_v15 = vmul.f32 %v2084_v9, %v587_v23  ;;  %v857_v51 = vadd.f32 %v825_v38, %v661_v33 }
 0x152   : > { %v1154_v14 = vadd.f32 %v1153_v11, %v1123_v35  ;;  %v1086_v19 = vadd.f32 %v1085_v17, %v895_v7  ;;  %v662_v22 = vadd.f32 %v630_v15, %v2478_v8  ;;  %v896_v48 = vadd.f32 %v2192_v6, %v857_v51  ;;  %v787_v58 = vpop.permute.xlu0 %786 }
 0x153   : > { %v591_v50 = vpop.permute.xlu1 %590  ;;  %v827_v24 = vmul.f32 %v2086_v10, %v787_v58 }
 0x154   : > { %v1155_v28 = vadd.f32 %v1154_v14, %v1124_v42  ;;  %v858_v54 = vadd.f32 %v826_v12, %v662_v22  ;;  %v631_v57 = vmul.f32 %v2084_v9, %v591_v50  ;;  %v1087_v47 = vadd.f32 %v1086_v19, %v896_v48 }
 0x155   : > { %v1125_v29 = vmul.f32 %v896_v48, %v896_v48 }
 0x156   : > { %v897_v20 = vadd.f32 %v2192_v6, %v858_v54  ;;  %v663_v55 = vadd.f32 %v631_v57, %v2479_v21 }
 0x157   : > { %v1156_v2 = vadd.f32 %v1155_v28, %v1125_v29  ;;  %v595_v41 = vpop.permute.xlu1 %594 }
 0x158   : > { %v1472_v3 = vpack.c.bf16 %v897_v20, %v896_v48  ;;  %v1088_v60 = vadd.f32 %v1087_v47, %v897_v20  ;;  %v1126_v59 = vmul.f32 %v897_v20, %v897_v20  ;;  %v859_v1 = vadd.f32 %v827_v24, %v663_v55 }
 0x159   : > { %v632_v39 = vmul.f32 %v2084_v9, %v595_v41 }
 0x15a   : > { %1492 = vst [vmem:[%s2230_s14 + $0x70] sm:$0xff] %v1472_v3   ;;  %v1157_v30 = vadd.f32 %v1156_v2, %v1126_v59  ;;  %v898_v18 = vadd.f32 %v2192_v6, %v859_v1 }
 0x15b   : > { %v664_v46 = vadd.f32 %v632_v39, %v2480_v52 }
 0x15c   : > { %v1127_v34 = vmul.f32 %v898_v18, %v898_v18  ;;  %v791_v25 = vpop.permute.xlu1 %790  ;;  %v1089_v61 = vadd.f32 %v1088_v60, %v898_v18 }
 0x15d   : > { %v828_v44 = vmul.f32 %v2086_v10, %v791_v25 }
 0x15e   : > { %v1158_v31 = vadd.f32 %v1157_v30, %v1127_v34 }
 0x15f   : > { %v860_v62 = vadd.f32 %v828_v44, %v664_v46 }
 0x161   : > { %v899_v9 = vadd.f32 %v2192_v6, %v860_v62 }
 0x163   : > { %v1477_v43 = vpack.c.bf16 %v899_v9, %v898_v18  ;;  %v1090_v5 = vadd.f32 %v1089_v61, %v899_v9  ;;  %v1128_v10 = vmul.f32 %v899_v9, %v899_v9 }
 0x165   : > { %1493 = vst [vmem:[%s2230_s14 + $0x78] sm:$0xff] %v1477_v43   ;;  %v1091_v40 = vrot.slane %v1090_v5, 4  ;;  %v1159_v37 = vadd.f32 %v1158_v31, %v1128_v10 }
 0x166   : > { %1580 = shalt.err (!%p1577_p5)
}
 0x167   : > { %s1581_s9 = scalar_lea.hbm %s2378_s29, 2048  ;;  %s1585_s13 = scalar_lea.hbm %s2455_s3, 4096 }
 0x168   : > { %p1582_p6 = scmp.ne.s32.totalorder %s2378_s29, %s1581_s9  ;;  %p1586_p10 = scmp.lt.s32.totalorder %s2378_s29, %s2455_s3 }
 0x169   : > { %p1587_p11 = scmp.lt.s32.totalorder %s1585_s13, %s1581_s9 }
 0x16a   : > { %p1583_p7 = pnand %p1582_p6, %p1747_p4 }
 0x16b   : > { %p1588_p12 = por %p1587_p11, %p1586_p10 }
 0x16c   : > { %p1584_p9 = pneg %p1583_p7 }
 0x16e   : > { %p1589_p13 = pnand %p1588_p12, %p1584_p9 }
 0x170   : > { %1592 = shalt.err (!%p1589_p13)
}
 0x171   : > { %s1679_s24 = smov 64   ;;  %s1680_s26 = smov 4   ;;  %v1092_v6 = vadd.f32 %v1091_v40, %v1090_v5  ;;  %v1160_v13 = vrot.slane %v1159_v37, 4  ;;  %vm1166_vm0 = vcmask 1040384  }
 0x172   : > { %1494 = dma.vmem_to_hbm [thread:$0]  (%p1747_p4), %s2380_s22, 2048, %s2378_s29, %s1170_s30, %s1679_s24, %s1679_s24, %s1680_s26  }
 0x173   : > { %s1322_s5 = sshll.u32 %s2169_s10, 1  ;;  %v1093_v45 = vrot.slane %v1092_v6, 2  ;;  %v1161_v36 = vadd.f32 %v1160_v13, %v1159_v37  ;;  %s1362_s6 = sshll.u32 %s1665_s18, 5 }
 0x174   : > { %s228_s7 = scalar_lea.vmem [#allocation4], %s1322_s5  ;;  %s2411_s29 = scalar_lea.hbm %s2456_s4, %s1362_s6 }
 0x175   : > { %v1094_v27 = vadd.f32 %v1093_v45, %v1092_v6  ;;  %v1162_v53 = vrot.slane %v1161_v36, 2  ;;  %s1207_s8 = sshll.u32 %s228_s7, 4  ;;  %s1175_s30 = scalar_lea.sflag [#allocation5], %s2169_s10  ;;  %s1208_s8 = int_to_ptr.vmem [resolvable:$true] %s1207_s8 }
 0x176   : > { %s1593_s11 = scalar_lea.vmem %s1208_s8, 32  ;;  %s1681_s18 = smov [#allocation4]  }
 0x177   : > { %v1095_v7 = vrot.slane %v1094_v27, 1  ;;  %v1163_v4 = vadd.f32 %v1162_v53, %v1161_v36  ;;  %p1594_p0 = scmp.ne.s32.totalorder %s1208_s8, %s1593_s11  ;;  %s1597_s12 = sshll.u32 %s1681_s18, 4  ;;  %s1598_s12 = int_to_ptr.vmem [resolvable:$false] %s1597_s12 }
 0x178   : > { %s1599_s13 = scalar_lea.vmem %s1598_s12, 64  ;;  %p1600_p3 = scmp.lt.s32.totalorder %s1208_s8, %s1598_s12 }
 0x179   : > { %v1164_v49 = vrot.slane %v1163_v4, 1  ;;  %v1096_v63 = vadd.f32 %v1095_v7, %v1094_v27  ;;  %p1595_p1 = pnand %p1594_p0, %p1747_p4  ;;  %p1601_p5 = scmp.lt.s32.totalorder %s1599_s13, %s1593_s11 }
 0x17b   : > { %v1165_v16 = vadd.f32 %v1164_v49, %v1163_v4  ;;  %p1596_p2 = pneg %p1595_p1  ;;  %p1602_p6 = por %p1601_p5, %p1600_p3 }
 0x17d   : > { %v1167_v26 = vsel %vm1166_vm0, %v1096_v63, %v1165_v16  ;;  %p1603_p7 = pnand %p1602_p6, %p1596_p2 }
 0x17e   : > { %1168 = vst [vmem:[%s228_s7] sm:$0x3] %v1167_v26 }
 0x17f   : > { %1606 = shalt.err (!%p1603_p7)
}
 0x180   : > { %s1607_s14 = scalar_lea.hbm %s2411_s29, 32  ;;  %s1611_s24 = scalar_lea.hbm %s2456_s4, 64 }
 0x181   : > { %p1608_p9 = scmp.ne.s32.totalorder %s2411_s29, %s1607_s14  ;;  %p1612_p12 = scmp.lt.s32.totalorder %s2411_s29, %s2456_s4 }
 0x182   : > { %p1613_p13 = scmp.lt.s32.totalorder %s1611_s24, %s1607_s14 }
 0x183   : > { %p1609_p10 = pnand %p1608_p9, %p1747_p4 }
 0x184   : > { %p1614_p0 = por %p1613_p13, %p1612_p12 }
 0x185   : > { %p1610_p11 = pneg %p1609_p10 }
 0x187   : > { %p1615_p1 = pnand %p1614_p0, %p1610_p11 }
 0x189   : > { %1618 = shalt.err (!%p1615_p1)
}
 0x18a   : > { %1495 = dma.vmem_to_hbm [thread:$0]  (%p1747_p4), %s1208_s8, 32, %s2411_s29, %s1175_s30  }
 0x18b PF: > { %p1505_p2 = scmp.ge.s32.totalorder %s1673_s20, 2  ;;  %s1219_s6 = sand.u32 1, %s1653_s15  }
 0x18c   : > { %s1220_s7 = scalar_lea.sflag [#allocation3], %s1219_s6 }
 0x18d   : > { %p1499_p3 = pnand %p1505_p2, %p1754_p8 }
 0x18f   : > { %p1500_p5 = pneg %p1499_p3 }
 0x191   : > { %1644 = dma.done.wait (%p1500_p5), %s1220_s7, 2048  }
 0x192   : > { %1646 = vsyncadd (%p1500_p5), %s1220_s7, 4294965248  ;;  %s1229_s9 = scalar_lea.sflag [#allocation5], %s1219_s6 }
 0x193   : > { %1648 = dma.done.wait (%p1500_p5), %s1229_s9, 32  }
 0x194   : > { %1650 = vsyncadd (%p1500_p5), %s1229_s9, 4294967264  ;;  %s21_s20 = sadd.s32 1, %s1673_s20   ;;  %s2481_s15 = smov %s1657_s16 }
 0x195   : > { %p18_p6 = scmp.ge.s32.totalorder %s21_s20, 4   ;;  %s2482_s16 = smov %s1661_s17 }
 0x196   : > { %s2483_s17 = smov %s1760_s28  ;;  %s2484_s18 = smov %s1669_s19 }
 0x197   : > { %s2485_s19 = smov %s2487_s23  ;;  %20 = sbr.rel (!%p18_p6) target bundleno = 6 (0x6), region = 84 }
 0x19c   :  { %1234 = vsyncpa [#allocation3], 1 }
 0x19d   :  { %1236 = vsyncpa [#allocation3 + $0x1], 1 }
 0x19e   :  { %1237 = vsyncpa [#allocation5], 1 }
 0x19f   :  { %1239 = vsyncpa [#allocation5 + $0x1], 1 }

</bundles_post_ra>
